<compile_context>
chip_gen: v7x
topology: tpu7x:2x2x1
jax: 0.10.0
libtpu: 0.0.40
codegen_flags: <defaults>
</compile_context>

<pallas_src>
import functools

import jax
import jax.numpy as jnp
from jax import lax
from jax.experimental import pallas as pl
from jax.experimental.pallas import tpu as pltpu

LANE = 128
TARGET_BLOCK_BYTES = 4 * 1024 * 1024      # ~4 MiB streamed block (per dtype, lane-padded)
CHUNK_ELEMS = 32 * 1024                   # ~32 f32 vregs of work per inner-loop step
SMALL_BYTES = TARGET_BLOCK_BYTES          # <= this (padded): single-block kernel
MAX_ROW_BYTES = 1 * 1024 * 1024           # wider rows than this + huge total -> flat fallback
MAX_SINGLE_BLOCK_BYTES = 16 * 1024 * 1024
CORE_SPLIT = 2                            # leading "parallel" grid axis (v7x: 2 TCs)
VMEM_LIMIT = 48 * 1024 * 1024


def _cdiv(a, b):
    return -(-a // b)


def _round_up(x, m):
    return ((x + m - 1) // m) * m


# ---------------------------------------------------------------------------
# Small tensors: one block, whole reduction, no grid.
# ---------------------------------------------------------------------------
def _sumsq_whole_kernel(x_ref, o_ref):
    x = x_ref[...].astype(jnp.float32)
    o_ref[0, 0] = jnp.sum(x * x)


_whole_call = pl.pallas_call(
    _sumsq_whole_kernel,
    out_shape=jax.ShapeDtypeStruct((1, 1), jnp.float32),
    in_specs=[pl.BlockSpec(memory_space=pltpu.VMEM)],
    out_specs=pl.BlockSpec(memory_space=pltpu.SMEM),
    compiler_params=pltpu.CompilerParams(vmem_limit_bytes=VMEM_LIMIT),
)


@jax.jit
def _whole_fn(x2d):
    return _whole_call(x2d)[0, 0]


# ---------------------------------------------------------------------------
# Large tensors: tiled, double-buffered streaming reduction.
# ---------------------------------------------------------------------------
def _make_tiled_kernel(M, N, row_tile, ch, blocks_per_core, total_steps):
    num_chunks = row_tile // ch
    full_blocks = M // row_tile            # row-blocks with no out-of-range rows
    always_full = full_blocks >= total_steps

    def kernel(x_ref, o_ref, acc_ref):
        p = pl.program_id(0)               # core split ("parallel")
        i = pl.program_id(1)               # row-block within this core ("arbitrary")
        g = p * blocks_per_core + i        # global (unclamped) row-block id

        @pl.when(i == 0)
        def _init():
            acc_ref[...] = jnp.zeros_like(acc_ref)

        def accumulate(masked):
            def body(c, carry):
                r0 = pl.multiple_of(c * ch, 8)
                chunk = x_ref[pl.ds(r0, ch), :].astype(jnp.float32)
                if masked:
                    row0 = g * row_tile + c * ch
                    rows = row0 + lax.broadcasted_iota(jnp.int32, (ch, N), 0)
                    chunk = jnp.where(rows < M, chunk, 0.0)
                acc_ref[...] += chunk * chunk          # pure VPU, no reshapes
                return carry
            lax.fori_loop(0, num_chunks, body, 0)

        if always_full:
            accumulate(False)
        else:
            @pl.when(g < full_blocks)
            def _fast():
                accumulate(False)

            @pl.when(g >= full_blocks)
            def _tail():
                accumulate(True)

        @pl.when(i == blocks_per_core - 1)
        def _finalize():
            # One cross-lane reduction per tensor per core.
            o_ref[0, 0] = jnp.sum(acc_ref[...])

    return kernel


@functools.lru_cache(maxsize=None)
def _build_tiled_call(M, N, dtype_name, row_tile, ch):
    del dtype_name  # part of the cache key only; jit retraces per dtype anyway
    num_real_blocks = _cdiv(M, row_tile)
    split = CORE_SPLIT if num_real_blocks >= CORE_SPLIT else 1
    blocks_per_core = _cdiv(num_real_blocks, split)
    total_steps = split * blocks_per_core
    last_block = num_real_blocks - 1

    kernel = _make_tiled_kernel(M, N, row_tile, ch, blocks_per_core, total_steps)

    def in_index(p, i):
        g = p * blocks_per_core + i
        # Clamp the (at most one) padded grid step; its rows are fully masked.
        return (jnp.minimum(g, last_block), 0)

    call = pl.pallas_call(
        kernel,
        out_shape=jax.ShapeDtypeStruct((split, 1), jnp.float32),
        grid=(split, blocks_per_core),
        in_specs=[pl.BlockSpec((row_tile, N), in_index)],
        out_specs=pl.BlockSpec((1, 1), lambda p, i: (p, 0),
                               memory_space=pltpu.SMEM),
        scratch_shapes=[pltpu.VMEM((ch, N), jnp.float32)],
        compiler_params=pltpu.CompilerParams(
            dimension_semantics=("parallel", "arbitrary"),
            vmem_limit_bytes=VMEM_LIMIT,
        ),
    )
    # Tiny epilogue: add the per-core partial sums.
    return jax.jit(lambda x2d: jnp.sum(call(x2d)))


# ---------------------------------------------------------------------------
# Dispatch / host wrapper.
# ---------------------------------------------------------------------------
def _tile_params(N, itemsize):
    n_pad = _round_up(max(N, 1), LANE)               # lane-padded row width
    row_bytes = n_pad * itemsize
    ch = max(8, ((CHUNK_ELEMS // n_pad) // 8) * 8)    # rows per inner-loop chunk
    rows_target = max(1, TARGET_BLOCK_BYTES // row_bytes)
    row_tile = max(ch, (rows_target // ch) * ch)      # rows per streamed block
    return row_tile, ch, row_bytes


def _as_2d(t):
    if t.ndim == 0:
        return t.reshape(1, 1)
    if t.ndim == 1:
        return t.reshape(1, t.shape[0])
    if t.ndim == 2:
        return t
    return t.reshape(-1, t.shape[-1])                 # leading-dim collapse (layout-free)


def _sumsq_scalar(t):
    """sum(t ** 2) as a float32 scalar, computed by a Pallas TPU kernel."""
    if t.size == 0:
        return jnp.zeros((), jnp.float32)

    x2d = _as_2d(t)
    itemsize = jnp.dtype(x2d.dtype).itemsize
    M, N = x2d.shape
    row_tile, ch, row_bytes = _tile_params(N, itemsize)

    if row_bytes > MAX_ROW_BYTES and _round_up(M, 8) * row_bytes > MAX_SINGLE_BLOCK_BYTES:
        # Ultra-wide rows: reduce over a flat (rows, 128) view instead
        # (costs one device-side copy; rare extreme shapes only).
        flat = t.reshape(-1)
        pad = (-flat.shape[0]) % (8 * LANE)
        if pad:
            flat = jnp.pad(flat, (0, pad))            # zeros do not change sum(x**2)
        x2d = flat.reshape(-1, LANE)
        M, N = x2d.shape
        row_tile, ch, row_bytes = _tile_params(N, itemsize)

    padded_bytes = _round_up(M, 8) * row_bytes
    if padded_bytes <= SMALL_BYTES or _cdiv(M, row_tile) < 2:
        return _whole_fn(x2d)
    return _build_tiled_call(M, N, str(x2d.dtype), row_tile, ch)(x2d)


def pt_module_forward(input_data):
    """Mirror PtModule.forward: list of tensors -> list of scalar sums of squares."""
    results = []
    for t in input_data:
        t = jnp.asarray(t)
        # TODO(synk): integer inputs are reduced in float32 (PyTorch would return an
        # integer-dtype sum); 64-bit dtypes are narrowed to 32-bit for TPU.
        if t.dtype == jnp.float64:
            t = t.astype(jnp.float32)
        elif t.dtype == jnp.int64:
            t = t.astype(jnp.int32)
        results.append(_sumsq_scalar(t))
    return results


if __name__ == "__main__":
    key = jax.random.PRNGKey(0)
    k1, k2, k3, k4, k5 = jax.random.split(key, 5)
    inputs = [
        jax.random.normal(k1, (2, 4, 16, 16), dtype=jnp.float32),          # small path
        jax.random.normal(k2, (8, 32), dtype=jnp.float32),                  # small path
        jax.random.normal(k3, (2, 4, 8), dtype=jnp.float32).astype(jnp.bfloat16),  # native bf16
        jax.random.normal(k4, (520, 520), dtype=jnp.float32),               # small path, non-128 lanes
        jax.random.normal(k5, (4100, 520), dtype=jnp.float32),              # tiled path: multi-block,
                                                                            # tail mask, 2-core split
        jnp.arange(97, dtype=jnp.int32),                                    # int -> f32 in-kernel
    ]

    results = pt_module_forward(inputs)
    results = [jax.block_until_ready(r) for r in results]

    ok = True
    for r, t in zip(results, inputs):
        ref = jnp.sum(t.astype(jnp.float32) ** 2)
        if not jnp.allclose(r, ref, rtol=1e-4, atol=1e-3):
            ok = False
            print("MISMATCH:", float(r), float(ref))
    assert ok
    print("KERNEL_OK")
</pallas_src>

<mosaic_0001>
module attributes {stable_mosaic.version = 11 : i64} {
  func.func @_sumsq_whole_kernel(%arg0: memref<128x16xf32, #tpu.memory_space<vmem>>, %arg1: memref<1x1xf32, #tpu.memory_space<smem>>) attributes {dimension_semantics = [], scalar_prefetch = 0 : i64, scratch_operands = 0 : i64, tpu.core_type = #tpu.core_type<tc>} {
    %c0 = arith.constant 0 : index
    %c0_0 = arith.constant 0 : index
    %0 = vector.load %arg0[%c0, %c0_0] : memref<128x16xf32, #tpu.memory_space<vmem>>, vector<128x16xf32>
    %1 = arith.mulf %0, %0 : vector<128x16xf32>
    %2 = vector.shape_cast %1 : vector<128x16xf32> to vector<1x128x16xf32>
    %cst = arith.constant dense<0.000000e+00> : vector<1xf32>
    %3 = vector.multi_reduction <add>, %2, %cst [1, 2] : vector<1x128x16xf32> to vector<1xf32>
    %4 = vector.shape_cast %3 : vector<1xf32> to vector<1x1x1xf32>
    %5 = vector.extract %4[0, 0, 0] : f32 from vector<1x1x1xf32>
    %c0_1 = arith.constant 0 : index
    %c0_2 = arith.constant 0 : index
    %6 = memref.load %arg1[%c0_1, %c0_2] : memref<1x1xf32, #tpu.memory_space<smem>>
    memref.store %5, %arg1[%c0_1, %c0_2] : memref<1x1xf32, #tpu.memory_space<smem>>
    return
  }
}

</mosaic_0001>

<bundles_post_ra>
// kernel: _whole_fn.1
= control target key start
LH: loop header
LB: loop body
LE: loop exit
PB: predicated region body
PF: predicated region fallthrough
CT: control target
= control target key end

     0   :  { %vm41_vm0 = vcmask 130048   ;;  %s199_s0 = inlined_call_operand.vmem [shape: f32[128,16], index: 0, kind: input, shape index: {}]   ;;  %s200_s1 = inlined_call_operand.hbm [shape: f32[1,1], index: 1, kind: output, shape index: {}]  }
   0x1   :  { %v9_v0 = vld [vmem:[%s199_s0] sm:$0xff]  ;;  %v10_v1 = vld [vmem:[%s199_s0 + $0x8] sm:$0xff]  ;;  %v11_v2 = vld [vmem:[%s199_s0 + $0x10] sm:$0xff] }
   0x2   :  { %v12_v3 = vld [vmem:[%s199_s0 + $0x18] sm:$0xff]  ;;  %v13_v4 = vld [vmem:[%s199_s0 + $0x20] sm:$0xff]  ;;  %v25_v5 = vmul.f32 %v9_v0, %v9_v0  ;;  %v26_v6 = vmul.f32 %v10_v1, %v10_v1  ;;  %v27_v7 = vmul.f32 %v11_v2, %v11_v2  ;;  %v14_v9 = vld [vmem:[%s199_s0 + $0x28] sm:$0xff] }
   0x3   :  { %v28_v8 = vmul.f32 %v12_v3, %v12_v3  ;;  %v29_v11 = vmul.f32 %v13_v4, %v13_v4  ;;  %v15_v13 = vld [vmem:[%s199_s0 + $0x30] sm:$0xff] }
   0x4   :  { %v42_v10 = vsel %vm41_vm0, %v25_v5, 0.0  ;;  %v43_v12 = vsel %vm41_vm0, %v26_v6, 0.0 }
   0x5   :  { %v44_v14 = vadd.f32 %v43_v12, %v42_v10 }
   0x6   :  { %6 = vsyncpa [#allocation3], 0  ;;  %v30_v15 = vmul.f32 %v14_v9, %v14_v9  ;;  %v45_v16 = vsel %vm41_vm0, %v27_v7, 0.0  ;;  %v47_v17 = vsel %vm41_vm0, %v28_v8, 0.0  ;;  %v16_v18 = vld [vmem:[%s199_s0 + $0x38] sm:$0xff]  ;;  %v31_v20 = vmul.f32 %v15_v13, %v15_v13  ;;  %v17_v22 = vld [vmem:[%s199_s0 + $0x40] sm:$0xff] }
   0x7   :  { %v46_v19 = vadd.f32 %v45_v16, %v44_v14  ;;  %v49_v21 = vsel %vm41_vm0, %v29_v11, 0.0  ;;  %v32_v24 = vmul.f32 %v16_v18, %v16_v18  ;;  %v18_v26 = vld [vmem:[%s199_s0 + $0x48] sm:$0xff]  ;;  %v33_v28 = vmul.f32 %v17_v22, %v17_v22  ;;  %v19_v30 = vld [vmem:[%s199_s0 + $0x50] sm:$0xff]  ;;  %v20_v34 = vld [vmem:[%s199_s0 + $0x58] sm:$0xff]  ;;  %s100_s11 = scalar_lea.hbm %s200_s1, 16 }
   0x8   :  { %v51_v25 = vsel %vm41_vm0, %v30_v15, 0.0  ;;  %v53_v29 = vsel %vm41_vm0, %v31_v20, 0.0  ;;  %v34_v32 = vmul.f32 %v18_v26, %v18_v26  ;;  %v35_v36 = vmul.f32 %v19_v30, %v19_v30  ;;  %v21_v38 = vld [vmem:[%s199_s0 + $0x60] sm:$0xff]  ;;  %v22_v42 = vld [vmem:[%s199_s0 + $0x68] sm:$0xff]  ;;  %v23_v46 = vld [vmem:[%s199_s0 + $0x70] sm:$0xff]  ;;  %p101_p0 = scmp.ne.s32.totalorder %s200_s1, %s100_s11  ;;  %p104_p1 = scmp.lt.u32.totalorder %s100_s11, %s200_s1 }
   0x9   :  { %v48_v23 = vadd.f32 %v47_v17, %v46_v19  ;;  %v55_v33 = vsel %vm41_vm0, %v32_v24, 0.0  ;;  %v57_v37 = vsel %vm41_vm0, %v33_v28, 0.0  ;;  %v36_v40 = vmul.f32 %v20_v34, %v20_v34  ;;  %v24_v50 = vld [vmem:[%s199_s0 + $0x78] sm:$0xff] }
   0xa   :  { %v59_v41 = vsel %vm41_vm0, %v34_v32, 0.0  ;;  %v37_v44 = vmul.f32 %v21_v38, %v21_v38  ;;  %v61_v45 = vsel %vm41_vm0, %v35_v36, 0.0  ;;  %v38_v48 = vmul.f32 %v22_v42, %v22_v42  ;;  %p106_p2 = pnand %p104_p1, %p101_p0 }
   0xb   :  { %v50_v27 = vadd.f32 %v49_v21, %v48_v23  ;;  %v63_v49 = vsel %vm41_vm0, %v36_v40, 0.0  ;;  %v39_v52 = vmul.f32 %v23_v46, %v23_v46  ;;  %v40_v55 = vmul.f32 %v24_v50, %v24_v50 }
   0xc   :  { %v65_v53 = vsel %vm41_vm0, %v37_v44, 0.0  ;;  %v67_v56 = vsel %vm41_vm0, %v38_v48, 0.0 }
   0xd   :  { %v52_v31 = vadd.f32 %v51_v25, %v50_v27  ;;  %v69_v58 = vsel %vm41_vm0, %v39_v52, 0.0  ;;  %v71_v60 = vsel %vm41_vm0, %v40_v55, 0.0 }
   0xf   :  { %v54_v35 = vadd.f32 %v53_v29, %v52_v31 }
  0x11   :  { %v56_v39 = vadd.f32 %v55_v33, %v54_v35 }
  0x13   :  { %v58_v43 = vadd.f32 %v57_v37, %v56_v39 }
  0x15   :  { %v60_v47 = vadd.f32 %v59_v41, %v58_v43 }
  0x17   :  { %v62_v51 = vadd.f32 %v61_v45, %v60_v47 }
  0x19   :  { %v64_v54 = vadd.f32 %v63_v49, %v62_v51 }
  0x1b   :  { %v66_v57 = vadd.f32 %v65_v53, %v64_v54 }
  0x1d   :  { %v68_v59 = vadd.f32 %v67_v56, %v66_v57 }
  0x1f   :  { %v70_v61 = vadd.f32 %v69_v58, %v68_v59 }
  0x21   :  { %v72_v62 = vadd.f32 %v71_v60, %v70_v61 }
  0x23   :  { %73 = vadd.xlane.f32.xlu0 %v72_v62 }
  0xb0   :  { %v74_v63 = vpop.xlane.xlu0 %73 }
  0xb1   :  { %v75_v0 = vrot.slane %v74_v63, 4 }
  0xb3   :  { %v76_v1 = vadd.f32 %v75_v0, %v74_v63 }
  0xb5   :  { %v77_v2 = vrot.slane %v76_v1, 2 }
  0xb7   :  { %v78_v3 = vadd.f32 %v77_v2, %v76_v1 }
  0xb9   :  { %v79_v4 = vrot.slane %v78_v3, 1 }
  0xbb   :  { %v80_v5 = vadd.f32 %v79_v4, %v78_v3 }
  0xbd   :  { %97 = vpush %v80_v5 }
  0xee   :  { %s98_s0 = spop %97 }
  0xef   :  { %83 = sst [smem:[#allocation2]] %s98_s0 }
  0xf0   :  { %109 = shalt.err (!%p106_p2)
}
  0xf1   :  { %s112_s16 = smov [#allocation2]  }
  0xf2   :  { %91 = dma.smem_to_hbm %s112_s16, 16, %s200_s1, [#allocation3]  }
  0xf3   :  { %110 = dma.done.wait [#allocation3], 16  }
  0xf4   :  { %111 = vsyncadd [#allocation3], 4294967280 }
  0xf5   :  { %95 = sfence }
  0xf6   :  { %96 = vsyncpa [#allocation3], 1 }

</bundles_post_ra>
